<compile_context>
chip_gen: v7x
topology: tpu7x:2x2x1
jax: 0.10.0
libtpu: 0.0.40
codegen_flags: <defaults>
</compile_context>

<pallas_src>
import jax
import jax.numpy as jnp
from jax.experimental import pallas as pl
from jax.experimental.pallas import tpu as pltpu


LANE = 128
_TARGET_BLOCK_BYTES = 4 << 20      # ~4 MiB of storage per input block


def _make_kernel(compute_dtype):
    def _kernel(params_ref, x_ref, o_ref):
        # params_ref: (2,) f32 SMEM ref holding [k, x0].
        k = params_ref[0]
        x0 = params_ref[1]
        neg_k = (-k).astype(compute_dtype)           # hoisted scalar ops
        kx0 = (k * x0).astype(compute_dtype)
        one = jnp.asarray(1.0, compute_dtype)

        xv = x_ref[...].astype(compute_dtype)
        z = neg_k * xv + kx0                         # == -k * (x - x0)
        sig = one / (one + jnp.exp(z))               # exact divide: hidden under HBM roofline
        # torch.clamp(..., 0, 1): redundant for an exact sigmoid but kept for
        # exact module semantics (2 cheap VPU ops on a memory-bound kernel).
        o_ref[...] = jnp.clip(sig, 0.0, 1.0).astype(o_ref.dtype)
    return _kernel


def _native_sublane(dtype):
    """Native sublane tile for the dtype: 8 (f32), 16 (bf16), 32 (int8/fp8)."""
    bits = jnp.dtype(dtype).itemsize * 8
    return max(8, 256 // bits)


def _compute_dtype_for(storage_dtype):
    """bf16 compute on chips with bf16 VPU/EUP (v6e/v7x); f32 everywhere else."""
    if jnp.dtype(storage_dtype) != jnp.dtype(jnp.bfloat16):
        return jnp.float32
    try:
        kind = jax.devices()[0].device_kind.lower()
    except Exception:
        kind = ""
    if ("v6" in kind) or ("v7" in kind):
        return jnp.bfloat16
    return jnp.float32


def _choose_width(n):
    """Largest lane-dense last dim that divides n (n is a multiple of 128)."""
    for w in (4096, 2048, 1024, 512, 256, 128):
        if n % w == 0:
            return w
    raise ValueError("n must be a multiple of 128")


def _pick_block_rows(rows, width, itemsize, sublane):
    """Byte-targeted, sublane-aligned block rows; prefer an even grid length."""
    target_rows = _TARGET_BLOCK_BYTES // (width * itemsize)
    target_rows = max(sublane, target_rows - (target_rows % sublane))

    if rows <= target_rows:
        if rows >= 2 * sublane:
            # Split into ~2 blocks so ("parallel",) can shard across both v7x TCs.
            half = -(-rows // 2)
            block_rows = half + (-half % sublane)
            if block_rows >= rows:
                block_rows = rows
            return block_rows
        return rows                     # full extent is always a legal block dim

    block_rows = target_rows
    g = -(-rows // block_rows)
    if g > 1 and g % 2 == 1:
        # Nudge toward an even grid (balanced across the two v7x TCs) as long as
        # the block stays >= ~2/3 of the byte target.
        cand = -(-rows // (g + 1))
        cand = max(sublane, cand + (-cand % sublane))
        if (-(-rows // cand)) % 2 == 0 and cand * 3 >= 2 * block_rows:
            block_rows = cand
    return block_rows


def _logistic_jax(x_flat, k_scalar, x0_scalar):
    """O(n) pure-JAX path for the <128-element ragged tail (or tiny inputs)."""
    xf = x_flat.astype(jnp.float32)
    out = jnp.clip(1.0 / (1.0 + jnp.exp(-k_scalar * (xf - x0_scalar))), 0.0, 1.0)
    return out.astype(x_flat.dtype)


def logistic_activation(x, k, x0=0.0):
    """Pallas implementation of LogisticActivation.forward.

    x : any-shaped float array (e.g. NCHW)
    k : array of shape (1,) -- the (non-trainable) slope parameter
    x0: sigmoid midpoint (python float or scalar)
    """
    orig_shape = x.shape
    orig_dtype = x.dtype

    k_scalar = jnp.asarray(k, jnp.float32).reshape(-1)[0]
    x0_scalar = jnp.asarray(x0, jnp.float32)

    xf = x.reshape(-1)                 # flatten: free for contiguous arrays
    n = xf.shape[0]

    bulk_n = (n // LANE) * LANE        # 128-aligned bulk handled by the kernel
    tail_n = n - bulk_n                # <128-element ragged tail: pure JAX

    pieces = []
    if bulk_n > 0:
        xb = xf[:bulk_n] if tail_n else xf
        width = _choose_width(bulk_n)
        rows = bulk_n // width
        itemsize = jnp.dtype(orig_dtype).itemsize
        sublane = _native_sublane(orig_dtype)
        block_rows = _pick_block_rows(rows, width, itemsize, sublane)
        block_bytes = block_rows * width * itemsize
        # Cover double-buffered in+out blocks plus headroom; v5e's scoped default
        # is only 16 MiB. Stays under physical VMEM on v5e/v6e/v7x.
        vmem_limit = int(min(48 << 20, max(32 << 20, 6 * block_bytes)))

        compute_dtype = _compute_dtype_for(orig_dtype)
        params = jnp.stack([k_scalar, x0_scalar])            # (2,) f32 -> SMEM

        x2d = xb.reshape(rows, width)
        grid = (pl.cdiv(rows, block_rows),)

        out2d = pl.pallas_call(
            _make_kernel(compute_dtype),
            out_shape=jax.ShapeDtypeStruct((rows, width), orig_dtype),
            grid_spec=pltpu.PrefetchScalarGridSpec(
                num_scalar_prefetch=0,
                grid=grid,
                in_specs=[
                    pl.BlockSpec(memory_space=pltpu.SMEM),                # [k, x0] scalars
                    pl.BlockSpec((block_rows, width), lambda i: (i, 0)),  # streaming input
                ],
                out_specs=pl.BlockSpec((block_rows, width), lambda i: (i, 0)),
            ),
            compiler_params=pltpu.CompilerParams(
                dimension_semantics=("parallel",),
                vmem_limit_bytes=vmem_limit,
            ),
        )(params, x2d)
        pieces.append(out2d.reshape(-1))

    if tail_n > 0:
        pieces.append(_logistic_jax(xf[bulk_n:], k_scalar, x0_scalar))

    out = pieces[0] if len(pieces) == 1 else jnp.concatenate(pieces)
    out = out.reshape(orig_shape)

    # torch .squeeze(): drop all size-1 dimensions (pure reshape glue)
    squeeze_axes = tuple(i for i, d in enumerate(orig_shape) if d == 1)
    if squeeze_axes:
        out = jnp.squeeze(out, axis=squeeze_axes)
    return out


if __name__ == "__main__":
    key = jax.random.PRNGKey(0)
    # NCHW input, as the PyTorch module would receive
    x = jax.random.normal(key, (2, 4, 16, 16), dtype=jnp.float32)

    # module __init__: x0=0, k=1 (shape (1,) FloatTensor parameter)
    x0 = 0.0
    k = jnp.ones((1,), dtype=jnp.float32)

    out = logistic_activation(x, k, x0)
    out = jax.block_until_ready(out)

    # sanity check against pure-JAX reference
    ref = jnp.clip(1.0 / (1.0 + jnp.exp(-k[0] * (x - x0))), 0.0, 1.0)
    assert out.shape == x.shape  # no size-1 dims here, squeeze is a no-op
    assert jnp.allclose(out, ref, atol=1e-6), "mismatch vs reference"

    # ragged-size path: 128-aligned bulk via the kernel + pure-JAX tail
    x2 = jax.random.normal(jax.random.PRNGKey(1), (3, 43), dtype=jnp.float32)  # 129 elems
    out2 = jax.block_until_ready(logistic_activation(x2, k, x0))
    ref2 = jnp.clip(1.0 / (1.0 + jnp.exp(-k[0] * (x2 - x0))), 0.0, 1.0)
    assert out2.shape == x2.shape
    assert jnp.allclose(out2, ref2, atol=1e-6), "mismatch vs reference (ragged)"

    print("KERNEL_OK")
</pallas_src>

<mosaic_0001>
module attributes {stable_mosaic.version = 11 : i64} {
  func.func @_kernel(%arg0: i32, %arg1: memref<2xf32, #tpu.memory_space<smem>>, %arg2: memref<1x2048xf32, #tpu.memory_space<vmem>>, %arg3: memref<1x2048xf32, #tpu.memory_space<vmem>>) attributes {dimension_semantics = [#tpu.dimension_semantics<parallel>], iteration_bounds = array<i64: 1>, scalar_prefetch = 0 : i64, scratch_operands = 0 : i64, tpu.core_type = #tpu.core_type<tc>, window_params = [{transform_indices = @transform_0, window_bounds = array<i64: 2>}, {transform_indices = @transform_1, window_bounds = array<i64: 1, 2048>}, {transform_indices = @transform_2, window_bounds = array<i64: 1, 2048>}]} {
    %c0 = arith.constant 0 : index
    %0 = memref.load %arg1[%c0] : memref<2xf32, #tpu.memory_space<smem>>
    %c1 = arith.constant 1 : index
    %1 = memref.load %arg1[%c1] : memref<2xf32, #tpu.memory_space<smem>>
    %cst = arith.constant 0.000000e+00 : f32
    %2 = arith.subf %cst, %0 : f32
    %3 = arith.mulf %0, %1 : f32
    %c0_0 = arith.constant 0 : index
    %c0_1 = arith.constant 0 : index
    %4 = vector.load %arg2[%c0_0, %c0_1] : memref<1x2048xf32, #tpu.memory_space<vmem>>, vector<1x2048xf32>
    %5 = vector.broadcast %2 : f32 to vector<1x2048xf32>
    %6 = arith.mulf %5, %4 : vector<1x2048xf32>
    %7 = vector.broadcast %3 : f32 to vector<1x2048xf32>
    %8 = arith.addf %6, %7 : vector<1x2048xf32>
    %9 = math.exp %8 : vector<1x2048xf32>
    %cst_2 = arith.constant 1.000000e+00 : f32
    %10 = vector.broadcast %cst_2 : f32 to vector<1x2048xf32>
    %11 = arith.addf %10, %9 : vector<1x2048xf32>
    %cst_3 = arith.constant 1.000000e+00 : f32
    %12 = vector.broadcast %cst_3 : f32 to vector<1x2048xf32>
    %13 = arith.divf %12, %11 : vector<1x2048xf32>
    %cst_4 = arith.constant 0.000000e+00 : f32
    %cst_5 = arith.constant 1.000000e+00 : f32
    %14 = vector.broadcast %cst_4 : f32 to vector<1x2048xf32>
    %15 = arith.maximumf %14, %13 : vector<1x2048xf32>
    %16 = vector.broadcast %cst_5 : f32 to vector<1x2048xf32>
    %17 = arith.minimumf %16, %15 : vector<1x2048xf32>
    %c0_6 = arith.constant 0 : index
    %c0_7 = arith.constant 0 : index
    %18 = vector.load %arg3[%c0_6, %c0_7] : memref<1x2048xf32, #tpu.memory_space<vmem>>, vector<1x2048xf32>
    tpu.vector_store %arg3[%c0_6, %c0_7], %17 {strides = array<i32>} : memref<1x2048xf32, #tpu.memory_space<vmem>>, vector<1x2048xf32>,
    return
  }
  func.func @transform_0(%arg0: i32) -> i32 {
    %c0_i32 = arith.constant 0 : i32
    %c0_i32_0 = arith.constant 0 : i32
    return %c0_i32 : i32
  }
  func.func @transform_1(%arg0: i32) -> (i32, i32) {
    %c0_i32 = arith.constant 0 : i32
    %c0_i32_0 = arith.constant 0 : i32
    return %arg0, %c0_i32 : i32, i32
  }
  func.func @transform_2(%arg0: i32) -> (i32, i32) {
    %c0_i32 = arith.constant 0 : i32
    %c0_i32_0 = arith.constant 0 : i32
    return %arg0, %c0_i32 : i32, i32
  }
}

</mosaic_0001>

<bundles_post_ra>
// kernel: tpu_custom_call.1
= control target key start
LH: loop header
LB: loop body
LE: loop exit
PB: predicated region body
PF: predicated region fallthrough
CT: control target
= control target key end

     0   :  { %7 = vsyncpa [#allocation5], 0  ;;  %s205_s0 = inlined_call_operand.hbm [shape: f32[2], index: 0, kind: input, shape index: {}]   ;;  %s206_s1 = inlined_call_operand.hbm [shape: f32[1,2048], index: 1, kind: input, shape index: {}]   ;;  %s207_s2 = inlined_call_operand.hbm [shape: f32[1,2048], index: 2, kind: output, shape index: {}]  }
   0x1   :  { %8 = vsyncpa [#allocation3], 0 }
   0x2   :  { %9 = vsyncpa [#allocation4], 0  ;;  %s91_s11 = scalar_lea.hbm %s205_s0, 16 }
   0x3   :  { %p92_p0 = scmp.ne.s32.totalorder %s205_s0, %s91_s11  ;;  %p95_p1 = scmp.lt.u32.totalorder %s91_s11, %s205_s0 }
   0x5   :  { %p97_p2 = pnand %p95_p1, %p92_p0 }
   0x7   :  { %100 = shalt.err (!%p97_p2)
}
   0x8   :  { %s151_s16 = smov [#allocation2]   ;;  %s152_s19 = smov [#allocation6]  }
   0x9   :  { %17 = dma.hbm_to_smem %s205_s0, 16, %s151_s16, [#allocation5]  }
   0xa   :  { %s24_s20 = sshll.u32 %s152_s19, 4  ;;  %s101_s23 = scalar_lea.hbm %s206_s1, 256  ;;  %s25_s20 = int_to_ptr.vmem [resolvable:$true] %s24_s20 }
   0xb   :  { %p102_p3 = scmp.ne.s32.totalorder %s206_s1, %s101_s23  ;;  %p105_p4 = scmp.lt.u32.totalorder %s101_s23, %s206_s1 }
   0xd   :  { %p107_p5 = pnand %p105_p4, %p102_p3 }
   0xf   :  { %110 = shalt.err (!%p107_p5)
}
  0x10   :  { %s111_s28 = scalar_lea.vmem %s25_s20, 256  ;;  %p116_p7 = scmp.lt.s32.totalorder %s25_s20, %s25_s20 }
  0x11   :  { %p112_p6 = scmp.ne.s32.totalorder %s25_s20, %s111_s28  ;;  %p117_p8 = scmp.lt.s32.totalorder %s111_s28, %s111_s28 }
  0x13   :  { %p118_p9 = por %p117_p8, %p116_p7 }
  0x15   :  { %p119_p10 = pnand %p118_p9, %p112_p6 }
  0x17   :  { %122 = shalt.err (!%p119_p10)
}
  0x18   :  { %27 = dma.hbm_to_vmem [thread:$0]  %s206_s1, 256, %s25_s20, [#allocation3]  }
  0x19   :  { %145 = dma.done.wait [#allocation5], 16  }
  0x1a   :  { %146 = vsyncadd [#allocation5], 4294967280 }
  0x1b   :  { %147 = dma.done.wait [#allocation3], 256  }
  0x1c   :  { %148 = vsyncadd [#allocation3], 4294967040 }
  0x1d   :  { %34 = sfence }
  0x1e   :  { %s35_s30 = sld [smem:[#allocation2]]  ;;  %s79_s3 = sld [smem:[#allocation2 + $0x1]]  ;;  %v39_v0 = vld [vmem:[#allocation6] sm:$0xff]  ;;  %v40_v1 = vld [vmem:[#allocation6 + $0x8] sm:$0xff] }
  0x1f   :  { %s153_s1 = smov [#allocation7]  }
  0x20   :  { %s69_s6 = sshll.u32 %s153_s1, 4  ;;  %s70_s6 = int_to_ptr.vmem [resolvable:$true] %s69_s6 }
  0x21   :  { %s123_s7 = scalar_lea.vmem %s70_s6, 256  ;;  %p128_p12 = scmp.lt.s32.totalorder %s70_s6, %s70_s6 }
  0x22   :  { %p124_p11 = scmp.ne.s32.totalorder %s70_s6, %s123_s7  ;;  %p129_p13 = scmp.lt.s32.totalorder %s123_s7, %s123_s7 }
  0x24   :  { %s37_s4 = ssub.f32 0.0, %s35_s30  ;;  %s38_s5 = smul.f32 %s79_s3, %s35_s30 }
  0x25   :  { %p130_p0 = por %p129_p13, %p128_p12 }
  0x26   :  { %v41_v2 = vstv %s37_s4  ;;  %v44_v3 = vstv %s38_s5 }
  0x27   :  { %v42_v4 = vmul.f32 %v41_v2, %v39_v0  ;;  %v43_v5 = vmul.f32 %v41_v2, %v40_v1  ;;  %p131_p1 = pnand %p130_p0, %p124_p11 }
  0x29   :  { %v45_v6 = vadd.f32 %v44_v3, %v42_v4  ;;  %v46_v7 = vadd.f32 %v44_v3, %v43_v5 }
  0x2b   :  { %v47_v8 = vmul.f32 1.442695, %v45_v6  ;;  %v49_v9 = vmul.f32 1.442695, %v46_v7 }
  0x2d   :  { %83 = vpow2.f32 %v47_v8 }
  0x2e   :  { %85 = vpow2.f32 %v49_v9 }
  0x37   :  { %v84_v10 = vpop.eup %83 }
  0x38   :  { %v86_v11 = vpop.eup %85  ;;  %v51_v12 = vadd.f32 1.0, %v84_v10 }
  0x39   :  { %v52_v13 = vadd.f32 1.0, %v86_v11 }
  0x3a   :  { %87 = vrcp.f32 %v51_v12 }
  0x3b   :  { %89 = vrcp.f32 %v52_v13 }
  0x44   :  { %v88_v14 = vpop.eup %87 }
  0x45   :  { %v90_v15 = vpop.eup %89  ;;  %v57_v16 = vmax.f32 %v88_v14, 0.0 }
  0x46   :  { %v58_v17 = vmax.f32 %v90_v15, 0.0 }
  0x47   :  { %v59_v18 = vmin.f32 %v57_v16, 1.0 }
  0x48   :  { %v60_v19 = vmin.f32 %v58_v17, 1.0 }
  0x49   :  { %61 = vst [vmem:[#allocation7] sm:$0xff] %v59_v18 }
  0x4a   :  { %62 = vst [vmem:[#allocation7 + $0x8] sm:$0xff] %v60_v19 }
  0x4b   :  { %134 = shalt.err (!%p131_p1)
}
  0x4c   :  { %s135_s10 = scalar_lea.hbm %s207_s2, 256 }
  0x4d   :  { %p136_p2 = scmp.ne.s32.totalorder %s207_s2, %s135_s10  ;;  %p139_p3 = scmp.lt.u32.totalorder %s135_s10, %s207_s2 }
  0x4f   :  { %p141_p4 = pnand %p139_p3, %p136_p2 }
  0x51   :  { %144 = shalt.err (!%p141_p4)
}
  0x52   :  { %72 = dma.vmem_to_hbm [thread:$0]  %s70_s6, 256, %s207_s2, [#allocation4]  }
  0x53   :  { %149 = dma.done.wait [#allocation4], 256  }
  0x54   :  { %150 = vsyncadd [#allocation4], 4294967040 }
  0x55   :  { %76 = vsyncpa [#allocation3], 1 }
  0x56   :  { %77 = vsyncpa [#allocation4], 1 }
  0x57   :  { %78 = vsyncpa [#allocation5], 1 }

</bundles_post_ra>
